<compile_context>
chip_gen: v7x
topology: tpu7x:2x2x1
jax: 0.10.0
libtpu: 0.0.40
codegen_flags: <defaults>
</compile_context>

<pallas_src>
import math
from functools import partial

import jax
import jax.numpy as jnp
import numpy as np
from jax import lax
from jax.experimental import pallas as pl
from jax.experimental.pallas import tpu as pltpu


def _round_up(x: int, m: int) -> int:
    return ((x + m - 1) // m) * m


# -----------------------------------------------------------------------------
# Parameter construction (glue, plain JAX)
# -----------------------------------------------------------------------------
def init_positional_embeddings(max_model_len: int, d_emb: int) -> jnp.ndarray:
    """Standard sinusoidal PE, returned as (d_emb, max_model_len) to match the
    PyTorch module's `pos_enc_max[:, :inp_len]` indexing convention."""
    pos = jnp.arange(max_model_len, dtype=jnp.float32)[None, :]        # (1, L)
    i = jnp.arange(0, d_emb, 2, dtype=jnp.float32)[:, None]            # (d/2, 1)
    angle = pos / jnp.power(10000.0, i / float(d_emb))                 # (d/2, L)
    pe = jnp.zeros((d_emb, max_model_len), dtype=jnp.float32)
    pe = pe.at[0::2, :].set(jnp.sin(angle))
    pe = pe.at[1::2, :].set(jnp.cos(angle))
    return pe


# -----------------------------------------------------------------------------
# Pallas kernel
# -----------------------------------------------------------------------------
def _embeddings_kernel(lens_ref, ids_ref, emb_ref, pe_ref, out_ref,
                       *, scale, tq, vocab_size):
    # grid = (bs, num_position_tiles)
    b = pl.program_id(0)
    j = pl.program_id(1)
    start = j * tq
    seq_len = lens_ref[b]                                   # scalar (SMEM)

    @pl.when(start < seq_len)
    def _():
        # Gather TQ embedding rows from the VMEM-resident table via a one-hot
        # MXU matmul: (TQ, V) @ (V, D) -> (TQ, D).
        ids = ids_ref[...].reshape(tq, 1)                   # (TQ, 1) int32
        vocab_iota = lax.broadcasted_iota(jnp.int32, (tq, vocab_size), 1)
        onehot = (ids == vocab_iota).astype(jnp.float32)    # (TQ, V)
        gathered = jnp.dot(onehot, emb_ref[...],
                           preferred_element_type=jnp.float32)   # (TQ, D) f32

        val = (gathered + pe_ref[...]) * scale              # (TQ, D)

        # Padding mask over the whole tile (ragged sequence lengths).
        pos = lax.broadcasted_iota(jnp.int32, (tq, 1), 0) + start
        val = jnp.where(pos < seq_len, val, 0.0)
        out_ref[...] = val.reshape(out_ref.shape)

    @pl.when(start >= seq_len)
    def _():
        # Fully-padded tail tile: no gather, no HBM read work, just zeros.
        out_ref[...] = jnp.zeros_like(out_ref)


def embeddings_forward(x, emb_matrix, pos_enc_max, d_emb, max_model_len):
    """Mirrors Embeddings.forward for `x: List[List[int]]`."""
    lens = [len(l) for l in x]
    max_len = min(max_model_len, max(lens))
    bs = len(x)
    vocab_size = emb_matrix.shape[0]

    # Position-tile size: dense 8x128 vregs; up to 512 tokens per tile.
    tq = min(512, _round_up(max_len, 8))
    padded_len = _round_up(max_len, tq)
    num_tiles = padded_len // tq

    # Pad ragged token ids to a rectangle; trailing singleton dim keeps the
    # token axis on sublanes inside the kernel (no cross-lane reshape needed).
    ids_np = np.zeros((bs, padded_len, 1), dtype=np.int32)
    clamped_lens = []
    for i, seq in enumerate(x):
        n = min(lens[i], max_len)
        clamped_lens.append(n)
        ids_np[i, :n, 0] = np.asarray(seq[:n], dtype=np.int32)
    ids = jnp.asarray(ids_np)
    lens_arr = jnp.asarray(clamped_lens, dtype=jnp.int32)    # (bs,) -> SMEM

    # Positional table, position-major, padded to padded_len rows.
    pe_t = pos_enc_max.T                                     # (max_model_len, D)
    if padded_len <= max_model_len:
        pe_pad = pe_t[:padded_len, :]
    else:
        pe_pad = jnp.concatenate(
            [pe_t, jnp.zeros((padded_len - max_model_len, d_emb), jnp.float32)],
            axis=0)

    scale = 1.0 / math.sqrt(float(d_emb))
    kernel = partial(_embeddings_kernel, scale=scale, tq=tq,
                     vocab_size=vocab_size)

    grid_spec = pltpu.PrefetchScalarGridSpec(
        num_scalar_prefetch=1,                               # lens -> SMEM
        grid=(bs, num_tiles),
        in_specs=[
            # token ids for this (batch, position-tile)
            pl.BlockSpec((1, tq, 1), lambda b, j, lens: (b, j, 0)),
            # full embedding table, VMEM-resident (constant block index)
            pl.BlockSpec((vocab_size, d_emb), lambda b, j, lens: (0, 0)),
            # positional-encoding rows for this position tile
            pl.BlockSpec((tq, d_emb), lambda b, j, lens: (j, 0)),
        ],
        out_specs=pl.BlockSpec((1, tq, d_emb), lambda b, j, lens: (b, j, 0)),
    )

    out = pl.pallas_call(
        kernel,
        out_shape=jax.ShapeDtypeStruct((bs, padded_len, d_emb), jnp.float32),
        grid_spec=grid_spec,
        compiler_params=pltpu.CompilerParams(
            # No carried state across either axis -> shardable on v7x megacore.
            dimension_semantics=("parallel", "parallel")),
    )(lens_arr, ids, emb_matrix, pe_pad)
    return out[:, :max_len, :]


# -----------------------------------------------------------------------------
# Pure-JAX reference (mirrors the PyTorch forward loop)
# -----------------------------------------------------------------------------
def embeddings_reference(x, emb_matrix, pos_enc_max, d_emb, max_model_len):
    lens = [len(l) for l in x]
    max_len = min(max_model_len, max(lens))
    bs = len(x)
    out = jnp.zeros((bs, max_len, d_emb), dtype=jnp.float32)
    for i in range(bs):
        ids = jnp.asarray(x[i], dtype=jnp.int32)
        e = emb_matrix[ids, :] + pos_enc_max[:, : lens[i]].T
        out = out.at[i, : lens[i], :].set(e)
    return out / jnp.sqrt(jnp.float32(d_emb))


if __name__ == "__main__":
    d_emb = 128
    vocab_size = 64
    max_model_len = 16

    # Deterministic parameter init. (The PyTorch module inits emb_matrix to
    # zeros; we use a deterministic normal so the gather path is exercised.)
    key = jax.random.PRNGKey(0)
    emb_matrix = jax.random.normal(key, (vocab_size, d_emb), dtype=jnp.float32)
    pos_enc_max = init_positional_embeddings(max_model_len, d_emb)

    # Ragged batch of token-id sequences (bs=2, lens 8 and 5 -> max_len=8).
    x = [[3, 1, 4, 1, 5, 9, 2, 6],
         [2, 7, 1, 8, 2]]

    out = embeddings_forward(x, emb_matrix, pos_enc_max, d_emb, max_model_len)
    out = jax.block_until_ready(out)

    ref = embeddings_reference(x, emb_matrix, pos_enc_max, d_emb, max_model_len)
    np.testing.assert_allclose(np.asarray(out), np.asarray(ref),
                               rtol=1e-5, atol=1e-5)
    print("KERNEL_OK")
</pallas_src>

<mosaic_0001>
module attributes {stable_mosaic.version = 11 : i64} {
  func.func @_embeddings_kernel(%arg0: i32, %arg1: i32, %arg2: memref<2xi32, #tpu.memory_space<smem>>, %arg3: memref<1x8x1xi32, #tpu.memory_space<vmem>>, %arg4: memref<64x128xf32, #tpu.memory_space<vmem>>, %arg5: memref<8x128xf32, #tpu.memory_space<vmem>>, %arg6: memref<1x8x128xf32, #tpu.memory_space<vmem>>) attributes {dimension_semantics = [#tpu.dimension_semantics<parallel>, #tpu.dimension_semantics<parallel>], iteration_bounds = array<i64: 2, 1>, scalar_prefetch = 1 : i64, scratch_operands = 0 : i64, tpu.core_type = #tpu.core_type<tc>, window_params = [{transform_indices = @transform_0, window_bounds = array<i64: 1, 8, 1>}, {pipeline_mode = #tpu.pipeline_mode<synchronous>, transform_indices = @transform_1, window_bounds = array<i64: 64, 128>}, {transform_indices = @transform_2, window_bounds = array<i64: 8, 128>}, {transform_indices = @transform_3, window_bounds = array<i64: 1, 8, 128>}]} {
    %c8_i32 = arith.constant 8 : i32
    %0 = arith.muli %arg1, %c8_i32 : i32
    %1 = arith.index_cast %arg0 : i32 to index
    %2 = memref.load %arg2[%1] : memref<2xi32, #tpu.memory_space<smem>>
    %3 = arith.cmpi slt, %0, %2 : i32
    %4 = arith.extui %3 : i1 to i32
    %c0_i32 = arith.constant 0 : i32
    %5 = arith.cmpi ne, %4, %c0_i32 : i32
    scf.if %5 {
      %c0 = arith.constant 0 : index
      %c0_1 = arith.constant 0 : index
      %c0_2 = arith.constant 0 : index
      %9 = vector.load %arg3[%c0, %c0_1, %c0_2] : memref<1x8x1xi32, #tpu.memory_space<vmem>>, vector<1x8x1xi32>
      %10 = vector.shape_cast %9 : vector<1x8x1xi32> to vector<8x1xi32>
      %11 = tpu.iota {dimensions = array<i32: 1>} : vector<8x64xi32>
      %12 = vector.broadcast %10 : vector<8x1xi32> to vector<8x64xi32>
      %13 = arith.cmpi eq, %12, %11 : vector<8x64xi32>
      %14 = arith.extui %13 : vector<8x64xi1> to vector<8x64xi32>
      %15 = arith.sitofp %14 : vector<8x64xi32> to vector<8x64xf32>
      %c0_3 = arith.constant 0 : index
      %c0_4 = arith.constant 0 : index
      %16 = vector.load %arg4[%c0_3, %c0_4] : memref<64x128xf32, #tpu.memory_space<vmem>>, vector<64x128xf32>
      %cst = arith.constant dense<0.000000e+00> : vector<8x128xf32>
      %17 = tpu.matmul %15, %16, %cst {dimension_numbers = #tpu.dot_dimension_numbers<[1], [0], [0], [1], [0, 0, 1, 1], [], []>} : vector<8x64xf32>, vector<64x128xf32>, vector<8x128xf32> -> vector<8x128xf32>
      %c0_5 = arith.constant 0 : index
      %c0_6 = arith.constant 0 : index
      %18 = vector.load %arg5[%c0_5, %c0_6] : memref<8x128xf32, #tpu.memory_space<vmem>>, vector<8x128xf32>
      %19 = arith.addf %17, %18 : vector<8x128xf32>
      %cst_7 = arith.constant 0.0883883461 : f32
      %20 = vector.broadcast %cst_7 : f32 to vector<8x128xf32>
      %21 = arith.mulf %19, %20 : vector<8x128xf32>
      %22 = tpu.iota {dimensions = array<i32: 0>} : vector<8x1xi32>
      %23 = vector.broadcast %0 : i32 to vector<8x1xi32>
      %24 = arith.addi %22, %23 : vector<8x1xi32>
      %25 = vector.broadcast %2 : i32 to vector<8x1xi32>
      %26 = arith.cmpi slt, %24, %25 : vector<8x1xi32>
      %cst_8 = arith.constant 0.000000e+00 : f32
      %27 = vector.shape_cast %26 : vector<8x1xi1> to vector<8x1xi1>
      %28 = vector.broadcast %27 : vector<8x1xi1> to vector<8x128xi1>
      %29 = vector.broadcast %cst_8 : f32 to vector<8x128xf32>
      %30 = arith.select %28, %21, %29 : vector<8x128xi1>, vector<8x128xf32>
      %31 = vector.shape_cast %30 : vector<8x128xf32> to vector<1x8x128xf32>
      %c0_9 = arith.constant 0 : index
      %c0_10 = arith.constant 0 : index
      %c0_11 = arith.constant 0 : index
      %32 = vector.load %arg6[%c0_9, %c0_10, %c0_11] : memref<1x8x128xf32, #tpu.memory_space<vmem>>, vector<1x8x128xf32>
      tpu.vector_store %arg6[%c0_9, %c0_10, %c0_11], %31 {strides = array<i32>} : memref<1x8x128xf32, #tpu.memory_space<vmem>>, vector<1x8x128xf32>,
    } else {
    }
    %6 = arith.cmpi sge, %0, %2 : i32
    %7 = arith.extui %6 : i1 to i32
    %c0_i32_0 = arith.constant 0 : i32
    %8 = arith.cmpi ne, %7, %c0_i32_0 : i32
    scf.if %8 {
      %cst = arith.constant 0.000000e+00 : f32
      %9 = vector.broadcast %cst : f32 to vector<1x8x128xf32>
      %c0 = arith.constant 0 : index
      %c0_1 = arith.constant 0 : index
      %c0_2 = arith.constant 0 : index
      %10 = vector.load %arg6[%c0, %c0_1, %c0_2] : memref<1x8x128xf32, #tpu.memory_space<vmem>>, vector<1x8x128xf32>
      tpu.vector_store %arg6[%c0, %c0_1, %c0_2], %9 {strides = array<i32>} : memref<1x8x128xf32, #tpu.memory_space<vmem>>, vector<1x8x128xf32>,
    } else {
    }
    return
  }
  func.func @transform_0(%arg0: i32, %arg1: i32, %arg2: memref<2xi32, #tpu.memory_space<smem>>) -> (i32, i32, i32) {
    %c0_i32 = arith.constant 0 : i32
    %c0_i32_0 = arith.constant 0 : i32
    return %arg0, %arg1, %c0_i32 : i32, i32, i32
  }
  func.func @transform_1(%arg0: i32, %arg1: i32, %arg2: memref<2xi32, #tpu.memory_space<smem>>) -> (i32, i32) {
    %c0_i32 = arith.constant 0 : i32
    %c0_i32_0 = arith.constant 0 : i32
    %c0_i32_1 = arith.constant 0 : i32
    return %c0_i32, %c0_i32_0 : i32, i32
  }
  func.func @transform_2(%arg0: i32, %arg1: i32, %arg2: memref<2xi32, #tpu.memory_space<smem>>) -> (i32, i32) {
    %c0_i32 = arith.constant 0 : i32
    %c0_i32_0 = arith.constant 0 : i32
    return %arg1, %c0_i32 : i32, i32
  }
  func.func @transform_3(%arg0: i32, %arg1: i32, %arg2: memref<2xi32, #tpu.memory_space<smem>>) -> (i32, i32, i32) {
    %c0_i32 = arith.constant 0 : i32
    %c0_i32_0 = arith.constant 0 : i32
    return %arg0, %arg1, %c0_i32 : i32, i32, i32
  }
}

</mosaic_0001>

<bundles_post_ra>
// kernel: tpu_custom_call.1
= control target key start
LH: loop header
LB: loop body
LE: loop exit
PB: predicated region body
PF: predicated region fallthrough
CT: control target
= control target key end

     0   :  { %s918_s0 = inlined_call_operand.vmem [shape: s32[2], index: 0, kind: input, shape index: {}]   ;;  %s919_s1 = inlined_call_operand.vmem [shape: s32[2,8,1], index: 1, kind: input, shape index: {}]   ;;  %s920_s2 = inlined_call_operand.hbm [shape: f32[64,128], index: 2, kind: input, shape index: {}]   ;;  %s921_s3 = inlined_call_operand.vmem [shape: f32[8,128], index: 3, kind: input, shape index: {}]   ;;  %s922_s4 = inlined_call_operand.hbm [shape: f32[2,8,128], index: 4, kind: output, shape index: {}]  }
   0x1   :  { %s9_s17 = sshll.u32 %s918_s0, 4  ;;  %s10_s17 = int_to_ptr.vmem [resolvable:$true] %s9_s17 }
   0x2   :  { %s592_s18 = scalar_lea.vmem %s10_s17, 16  ;;  %p597_p1 = scmp.lt.s32.totalorder %s10_s17, %s10_s17 }
   0x3   :  { %p593_p0 = scmp.ne.s32.totalorder %s10_s17, %s592_s18  ;;  %p598_p2 = scmp.lt.s32.totalorder %s592_s18, %s592_s18 }
   0x5   :  { %p599_p3 = por %p598_p2, %p597_p1 }
   0x7   :  { %p600_p4 = pnand %p599_p3, %p593_p0 }
   0x9   :  { %603 = shalt.err (!%p600_p4)  }
   0xa   :  { %s718_s19 = smov [#allocation3]  }
   0xb   :  { %12 = dma.vmem_to_smem %s10_s17, 16, %s718_s19, [#allocation2] }
   0xc   :  { %684 = dma.done.wait [#allocation2], 16 }
   0xd   :  { %685 = vsyncadd [#allocation2], 4294967280 }
   0xe   :  { %14 = sfence }
   0xf   :  { %15 = vsyncpa [#allocation5], 0 }
  0x10   :  { %16 = vsyncpa [#allocation6], 0 }
  0x11   :  { %18 = vsyncpa [#allocation6 + $0x1], 0  ;;  %s756_s20 = smov 0   ;;  %s758_s21 = smov 0  }
  0x12   :  { %s760_s0 = smov 0   ;;  %s762_s22 = smov 0  }
  0x13   :  { %s764_s23 = smov 0   ;;  %s766_s24 = smov 0  }
  0x14 LB: > { %s457_s25 = sadd.s32 4294967295, %s716_s24   ;;  %s458_s26 = sadd.s32 4294967294, %s716_s24   ;;  %s716_s24 = sphi %s766_s24, %s24_s24   ;;  %s712_s23 = sphi %s764_s23, %s940_s23   ;;  %s708_s22 = sphi %s762_s22, %s939_s22   ;;  %s704_s0 = sphi %s760_s0, %s938_s0   ;;  %s700_s21 = sphi %s758_s21, %s937_s21   ;;  %s696_s20 = sphi %s756_s20, %s936_s20  }
  0x15   : > { %s36_s27 = sadd.s32 1, %s712_s23  ;;  %s120_s28 = sadd.s32 1, %s704_s0 }
  0x16   : > { %p38_p5 = scmp.ge.s32.totalorder %s36_s27, 2  ;;  %p130_p6 = scmp.ne.s32.totalorder %s704_s0, %s700_s21 }
  0x17   : > { %p131_p7 = scmp.eq.s32.totalorder %s457_s25, 1  ;;  %p136_p8 = scmp.ne.s32.totalorder %s700_s21, %s696_s20 }
  0x18   : > { %s942_s27 = smov (%p38_p5, %s36_s27), 0  ;;  %p137_p10 = scmp.eq.s32.totalorder %s458_s26, 1 }
  0x19   : > { %p796_p9 = por %p131_p7, %p130_p6  ;;  %s115_s30 = ssub.s32 %s712_s23, %s942_s27 }
  0x1a   : > { %p459_p11 = scmp.ge.s32.totalorder %s716_s24, 1  ;;  %p118_p12 = scmp.eq.s32.totalorder %s115_s30, 0 }
  0x1b   : > { %s927_s29 = scalar_select %p796_p9, 1, 0 }
  0x1c   : > { %p803_p13 = por %p137_p10, %p136_p8  ;;  %p144_p0 = scmp.lt.s32.totalorder %s716_s24, 3 }
  0x1d   : > { %s809_s6 = scalar_select %p118_p12, %s704_s0, %s120_s28  }
  0x1e   : > { %s928_s5 = scalar_select %p803_p13, 1, 0 }
  0x1f   : > { %p811_p1 = pnand %p459_p11, %p144_p0  ;;  %p815_p2 = scmp.eq.s32.totalorder %s457_s25, 0 }
  0x20   : > { %s719_s9 = smov [#allocation4]   ;;  %s604_s14 = scalar_lea.hbm %s920_s2, 1024 }
  0x21   : > { %s929_s7 = scalar_select %p811_p1, 1, 0 }
  0x22   : > { %s930_s8 = scalar_select %p815_p2, 1, 0 }
  0x23   : > { %p523_p3 = pneg %p811_p1  ;;  %s156_s10 = sshll.u32 %s719_s9, 4  ;;  %s157_s10 = int_to_ptr.vmem [resolvable:$true] %s156_s10 }
  0x24   : > { %p605_p5 = scmp.ne.s32.totalorder %s920_s2, %s604_s14  ;;  %p611_p10 = scmp.lt.u32.totalorder %s604_s14, %s920_s2 }
  0x25   : > { %p823_p4 = pnand %p815_p2, %p523_p3 }
  0x27   : > { %p606_p6 = pneg %p823_p4 }
  0x29   : > { %p607_p7 = pnand %p606_p6, %p605_p5 }
  0x2b   : > { %p608_p8 = pneg %p607_p7 }
  0x2d   : > { %p613_p11 = pnand %p611_p10, %p608_p8 }
  0x2f   : > { %616 = shalt.err (!%p613_p11)
}
  0x30   : > { %s617_s19 = scalar_lea.vmem %s157_s10, 1024  ;;  %p625_p13 = scmp.lt.s32.totalorder %s157_s10, %s157_s10 }
  0x31   : > { %p618_p12 = scmp.ne.s32.totalorder %s157_s10, %s617_s19  ;;  %p626_p9 = scmp.lt.s32.totalorder %s617_s19, %s617_s19 }
  0x33   : > { %p620_p0 = pnand %p618_p12, %p606_p6  ;;  %p627_p2 = por %p626_p9, %p625_p13 }
  0x35   : > { %p621_p3 = pneg %p620_p0 }
  0x37   : > { %p628_p1 = pnand %p627_p2, %p621_p3 }
  0x39   : > { %631 = shalt.err (!%p628_p1)
}
  0x3a   : > { %s720_s25 = smov 128   ;;  %s721_s26 = smov 8  }
  0x3b   : > { %526 = dma.hbm_to_vmem [thread:$0]  (!%p823_p4), %s920_s2, 1024, %s157_s10, [#allocation5], %s720_s25, %s720_s25, %s721_s26  }
  0x3c   : > { %p932_p5 = scmp.ne.s32.totalorder %s929_s7, 0 }
  0x3d   : > { %p933_p7 = scmp.ne.s32.totalorder (!%p932_p5), %s930_s8, 0 }
  0x3e   : > { %189 = sbr.rel (%p932_p5) target bundleno = 462 (0x1ce), region = 32 }
  0x45   : > { %687 = dma.done.wait (%p933_p7), [#allocation5], 1024  }
  0x46   : > { %689 = vsyncadd (%p933_p7), [#allocation5], 4294966272  ;;  %s216_s9 = sand.u32 1, %s700_s21   ;;  %p219_p9 = scmp.lt.s32.totalorder %s708_s22, 1 }
  0x47   : > { %s852_s11 = sld [smem:[#allocation3 + %s708_s22]]  ;;  %s465_s10 = sshll.u32 %s216_s9, 3 }
  0x48   : > { %s220_s12 = scalar_select %p219_p9, %s708_s22, 1 }
  0x49   : > { %s860_s16 = scalar_lea.vmem [#allocation7], %s465_s10 }
  0x4a   : > { %s466_s7 = sshll.u32 %s220_s12, 3 }
  0x4b   : > { %s225_s15 = scalar_lea.vmem %s919_s1, %s466_s7 }
  0x4d   : > { %p468_p13 = scmp.le.s32.totalorder %s852_s11, 0 }
  0x4e   : > { %v236_v0 = vld [vmem:[%s225_s15] sm:$0xff] (!%p468_p13)  ;;  %v246_v2 = vld [vmem:[#allocation4 + $0x8] sm:$0xff] (!%p468_p13)  ;;  %v722_v3 = vmov (!%p468_p13), 0   ;;  %v723_v4 = vmov (!%p468_p13), 0.0|0.0   ;;  %v247_v6 = vld [vmem:[#allocation4 + $0x10] sm:$0xff] (!%p468_p13)  ;;  %vm724_vm0 = vmmov (!%p468_p13), 0   ;;  %v237_v16 = vlaneseq (!%p468_p13) }
  0x4f   : > { %235 = sbr.rel (%p468_p13) target bundleno = 428 (0x1ac), region = 40  ;;  %v245_v1 = vld [vmem:[#allocation4] sm:$0xff] (!%p468_p13)  ;;  %591 = vset.pattern.permute.xlu0 (!%p468_p13), %v722_v3  ;;  %505 = vmatprep.subr.bf16.mxu0 (!%p468_p13), %v723_v4  ;;  %v248_v7 = vld [vmem:[#allocation4 + $0x18] sm:$0xff] (!%p468_p13)  ;;  %v725_v9 = vmov (!%p468_p13), 0.0   ;;  %v250_v11 = vld [vmem:[#allocation4 + $0x28] sm:$0xff] (!%p468_p13)  ;;  %vm254_vm1 = vcmask (!%p468_p13), 523264   ;;  %v333_v22 = vstv (!%p468_p13), %s852_s11 }
  0x50   : > { %v506_v5 = vpack.c.bf16 (!%p468_p13), %v246_v2, %v245_v1  ;;  %240 = vperm.xlu0 (!%p468_p13), %591, %v236_v0   ;;  %v509_v8 = vpack.c.bf16 (!%p468_p13), %v248_v7, %v247_v6  ;;  %502 = vmatprep.mubr.msk.f32.mxu0 (!%p468_p13), %vm724_vm0, %v725_v9  ;;  %v249_v10 = vld [vmem:[#allocation4 + $0x20] sm:$0xff] (!%p468_p13)  ;;  %v251_v13 = vld [vmem:[#allocation4 + $0x30] sm:$0xff] (!%p468_p13)  ;;  %v252_v14 = vld [vmem:[#allocation4 + $0x38] sm:$0xff] (!%p468_p13)  ;;  %v238_v17 = vand.u32 (!%p468_p13), 127, %v237_v16  ;;  %v330_v21 = vshrl.u32 (!%p468_p13), %v237_v16, 7 }
  0x51   : > { %v512_v12 = vpack.c.bf16 (!%p468_p13), %v250_v11, %v249_v10  ;;  %v515_v15 = vpack.c.bf16 (!%p468_p13), %v252_v14, %v251_v13  ;;  %v253_v20 = vld [vmem:[%s921_s3] sm:$0xff] (!%p468_p13) }
  0x52   : > { %507 = vmatpush3.bf16.msra.mxu0 (!%p468_p13), %v506_v5  ;;  %vm334_vm3 = vcmp.lt.s32.totalorder (!%p468_p13), %v330_v21, %v333_v22 }
  0x53   : > { %508 = vmatprep.subr.bf16.mxu0 (!%p468_p13), %v723_v4 }
  0x56   : > { %510 = vmatpush3.bf16.msra.mxu0 %v509_v8 }
  0x57   : > { %511 = vmatprep.subr.bf16.mxu0 %v723_v4 }
  0x5a   : > { %513 = vmatpush3.bf16.msra.mxu0 %v512_v12 }
  0x5b   : > { %514 = vmatprep.subr.bf16.mxu0 %v723_v4 }
  0x5e   : > { %516 = vmatpush3.bf16.msra.mxu0 %v515_v15 }
  0xcf   : > { %v241_v18 = vpop.permute.xlu0 %240 }
  0xd0   : > { %vm242_vm2 = vcmp.eq.s32.totalorder %v241_v18, %v238_v17 }
  0xd1   : > { %v469_v19 = vsel %vm242_vm2, 1.0, %v725_v9 }
  0xd2   : > { %503 = vmatmul.mubr.msk.f32.vlgmr.msra.gmra.mrb[0].mxu0 %vm254_vm1, %v469_v19 }
 0x1a5   : > { %v324_v23 = vpop.f32.mrb[0].mxu0 }
 0x1a6   : > { %v325_v24 = vadd.f32 %v324_v23, %v253_v20  ;;  %v504_v25 = vpop.f32.mrb[1].mxu0 }
 0x1a8   : > { %v328_v26 = vmul.f32 0.088388346, %v325_v24 }
 0x1aa   : > { %v337_v27 = vsel %vm334_vm3, %v328_v26, 0.0 }
 0x1ab   : > { %338 = vst [vmem:[%s860_s16] sm:$0xff] %v337_v27 }
 0x1ac PF: > { %p472_p1 = scmp.gt.s32.totalorder %s852_s11, 0 }
 0x1ad   : > { %v726_v28 = vmov (!%p472_p1), 0.0  }
 0x1ae   : > { %342 = sbr.rel (%p472_p1) target bundleno = 437 (0x1b5), region = 44  ;;  %343 = vst [vmem:[%s860_s16] sm:$0xff] (!%p472_p1), %v726_v28 }
 0x1b5 PF: > { %s474_s18 = sshll.u32 %s708_s22, 7  ;;  %s359_s28 = sshll.u32 %s860_s16, 4  ;;  %s360_s28 = int_to_ptr.vmem [resolvable:$true] %s359_s28 }
 0x1b6   : > { %s874_s26 = scalar_lea.hbm %s922_s4, %s474_s18  ;;  %s345_s30 = scalar_lea.sflag [#allocation6], %s216_s9 }
 0x1b7   : > { %s632_s11 = scalar_lea.vmem %s360_s28, 128  ;;  %p934_p4 = scmp.ne.s32.totalorder %s927_s29, 0 }
 0x1b8   : > { %p633_p2 = scmp.ne.s32.totalorder %s360_s28, %s632_s11  ;;  %s727_s10 = smov [#allocation7]  }
 0x1b9   : > { %s636_s12 = sshll.u32 %s727_s10, 4  ;;  %s637_s12 = int_to_ptr.vmem [resolvable:$false] %s636_s12 }
 0x1ba   : > { %p634_p6 = pnand %p633_p2, %p934_p4  ;;  %s638_s7 = scalar_lea.vmem %s637_s12, 256 }
 0x1bb   : > { %p639_p10 = scmp.lt.s32.totalorder %s360_s28, %s637_s12  ;;  %p640_p11 = scmp.lt.s32.totalorder %s638_s7, %s632_s11 }
 0x1bc   : > { %p635_p8 = pneg %p634_p6 }
 0x1bd   : > { %p641_p12 = por %p640_p11, %p639_p10 }
 0x1bf   : > { %p642_p0 = pnand %p641_p12, %p635_p8 }
 0x1c1   : > { %645 = shalt.err (!%p642_p0)
}
 0x1c2   : > { %s646_s22 = scalar_lea.hbm %s874_s26, 128  ;;  %s650_s14 = scalar_lea.hbm %s922_s4, 256 }
 0x1c3   : > { %p647_p3 = scmp.ne.s32.totalorder %s874_s26, %s646_s22  ;;  %p651_p9 = scmp.lt.u32.totalorder %s874_s26, %s922_s4 }
 0x1c4   : > { %p652_p13 = scmp.lt.u32.totalorder %s650_s14, %s646_s22  ;;  %p654_p2 = scmp.lt.u32.totalorder %s646_s22, %s874_s26 }
 0x1c5   : > { %p648_p5 = pnand %p647_p3, %p934_p4 }
 0x1c6   : > { %p653_p1 = por %p652_p13, %p651_p9 }
 0x1c7   : > { %p649_p7 = pneg %p648_p5 }
 0x1c8   : > { %p655_p6 = por %p654_p2, %p653_p1 }
 0x1ca   : > { %p656_p8 = pnand %p655_p6, %p649_p7 }
 0x1cc   : > { %659 = shalt.err (!%p656_p8)
}
 0x1cd   : > { %521 = dma.vmem_to_hbm [thread:$0]  (%p934_p4), %s360_s28, 128, %s874_s26, %s345_s30  }
 0x1ce PF: > { %p533_p10 = scmp.ge.s32.totalorder %s716_s24, 2  ;;  %s371_s8 = sand.u32 1, %s696_s20  }
 0x1cf   : > { %p935_p11 = scmp.ne.s32.totalorder %s928_s5, 0  ;;  %s372_s17 = scalar_lea.sflag [#allocation6], %s371_s8 }
 0x1d1   : > { %p528_p12 = pnand %p533_p10, %p935_p11 }
 0x1d3   : > { %691 = dma.done.wait (!%p528_p12), %s372_s17, 128  }
 0x1d4   : > { %693 = vsyncadd (!%p528_p12), %s372_s17, 4294967168  ;;  %s24_s24 = sadd.s32 1, %s716_s24   ;;  %s936_s20 = smov %s700_s21 }
 0x1d5   : > { %p21_p0 = scmp.ge.s32.totalorder %s24_s24, 4   ;;  %s937_s21 = smov %s704_s0 }
 0x1d6   : > { %s938_s0 = smov %s809_s6  ;;  %s939_s22 = smov %s712_s23 }
 0x1d7   : > { %s940_s23 = smov %s942_s27  ;;  %23 = sbr.rel (!%p21_p0) target bundleno = 20 (0x14), region = 83 }
 0x1de   :  { %377 = vsyncpa [#allocation5], 1 }
 0x1df   :  { %379 = vsyncpa [#allocation5 + $0x1], 1 }
 0x1e0   :  { %380 = vsyncpa [#allocation6], 1 }
 0x1e1   :  { %382 = vsyncpa [#allocation6 + $0x1], 1 }

</bundles_post_ra>
